<compile_context>
chip_gen: v7x
topology: tpu7x:2x2x1
jax: 0.10.0
libtpu: 0.0.40
codegen_flags: <defaults>
</compile_context>

<pallas_src>
import functools

import jax
import jax.numpy as jnp
from jax.experimental import pallas as pl
from jax.experimental.pallas import tpu as pltpu


def _layer_norm_kernel(x_ref, w_ref, o_ref, *, eps):
    # x_ref: (tile_rows, H) block of hidden_states
    # w_ref: (1, H) weight in the activation dtype (VMEM-resident across steps)
    x = x_ref[...].astype(jnp.float32)
    # Single-pass statistics: both reductions read the same loaded x (XLU),
    # no materialized `centered` before the variance reduction.
    mean = jnp.mean(x, axis=-1, keepdims=True)
    mean_sq = jnp.mean(x * x, axis=-1, keepdims=True)
    var = jnp.maximum(mean_sq - mean * mean, 0.0)
    inv = jax.lax.rsqrt(var + eps)           # EUP slot -> effectively free
    y = (x - mean) * inv                     # f32
    # Weight multiply + store in the output dtype (bf16 VALU on v6e/v7x).
    o_ref[...] = (y.astype(o_ref.dtype) * w_ref[...]).astype(o_ref.dtype)


def _sublane_packing(dtype) -> int:
    # f32 -> 8, bf16/f16 -> 16, int8/fp8 -> 32 rows per packed vreg sublane group.
    itemsize = jnp.dtype(dtype).itemsize
    return max(8, 8 * (4 // max(itemsize, 1)))


def _vmem_capacity_bytes() -> int:
    """Physical VMEM per TensorCore; conservative (v7x) fallback if unknown."""
    try:
        info = pltpu.get_tpu_info()
        cap = getattr(info, "vmem_capacity_bytes", None)
        if cap:
            return int(cap)
    except Exception:
        pass
    return 64 * 1024 * 1024


def _vmem_limit_bytes(capacity: int) -> int:
    # ~62% of physical VMEM: 40 MiB on v7x (64 MiB), 80 MiB on v5e/v6e (128 MiB).
    return int(capacity * 0.625)


def _pick_tile_rows(n_rows: int, hidden: int, dtype, vmem_limit: int) -> int:
    """Byte-budgeted row-tile size (no fixed row cap)."""
    packing = _sublane_packing(dtype)
    itemsize = jnp.dtype(dtype).itemsize
    row_bytes = hidden * itemsize

    # Per-block VMEM footprint ~= 2x input + 2x output double buffers (in the
    # activation dtype) + ~3 full-block f32 temporaries inside the kernel.
    f32_ratio = max(1, 4 // itemsize)
    footprint_factor = 4 + 3 * f32_ratio          # f32: 7x, bf16: 10x, int8: 16x
    budget = int(vmem_limit * 0.8)                # leave Mosaic internal scratch
    target_block_bytes = max(budget // footprint_factor, row_bytes)

    tile = max(packing, target_block_bytes // max(row_bytes, 1))
    tile = (tile // packing) * packing            # multiple of sublane packing

    rows_rounded = ((n_rows + packing - 1) // packing) * packing
    tile = min(tile, rows_rounded)
    tile = max(tile, packing)

    # v7x megacore: make sure the grid has >= 2 steps whenever rows allow it,
    # so the "parallel" axis actually shards across both TensorCores.
    if pl.cdiv(n_rows, tile) == 1 and n_rows > packing:
        half = ((rows_rounded // 2) + packing - 1) // packing * packing
        tile = max(packing, min(tile, half))

    return tile


def layer_norm(hidden_states, weight, eps=1e-5, *, tile_rows=None):
    """Cohere LayerNorm forward. hidden_states: [..., H]; weight: [H]."""
    orig_shape = hidden_states.shape
    H = orig_shape[-1]
    x2d = hidden_states.reshape(-1, H)
    R = x2d.shape[0]

    capacity = _vmem_capacity_bytes()
    vmem_limit = _vmem_limit_bytes(capacity)
    if tile_rows is None:
        tile_rows = _pick_tile_rows(R, H, x2d.dtype, vmem_limit)

    # Weight is applied after the downcast, so ship it in the activation dtype.
    w2d = weight.astype(x2d.dtype).reshape(1, H)
    grid = (pl.cdiv(R, tile_rows),)

    kernel = functools.partial(_layer_norm_kernel, eps=float(eps))

    out = pl.pallas_call(
        kernel,
        out_shape=jax.ShapeDtypeStruct((R, H), x2d.dtype),
        grid_spec=pltpu.PrefetchScalarGridSpec(
            num_scalar_prefetch=0,
            grid=grid,
            in_specs=[
                pl.BlockSpec((tile_rows, H), lambda i: (i, 0)),
                pl.BlockSpec((1, H), lambda i: (0, 0)),   # grid-invariant weight
            ],
            out_specs=pl.BlockSpec((tile_rows, H), lambda i: (i, 0)),
        ),
        compiler_params=pltpu.CompilerParams(
            dimension_semantics=("parallel",),
            vmem_limit_bytes=vmem_limit,
        ),
    )(x2d, w2d)

    return out.reshape(orig_shape)


class LayerNormModule:
    """Mirror of the PyTorch LayerNorm module (weight-only, no bias)."""

    def __init__(self, hidden_size, eps=1e-5):
        # deterministic init: ones, like nn.Parameter(torch.ones(hidden_size))
        self.weight = jnp.ones((hidden_size,), dtype=jnp.float32)
        self.variance_epsilon = eps
        # TODO(synk): weight_loader / tensor-parallel sharding is host-side weight
        # loading logic with no kernel equivalent; omitted.

    def __call__(self, hidden_states, residuals=None):
        out = layer_norm(hidden_states, self.weight, self.variance_epsilon)
        return (out, residuals)


def _reference(hidden_states, weight, eps):
    x = hidden_states.astype(jnp.float32)
    mean = x.mean(-1, keepdims=True)
    var = jnp.mean((x - mean) ** 2, axis=-1, keepdims=True)
    x = (x - mean) * jax.lax.rsqrt(var + eps)
    x = weight.astype(jnp.float32) * x
    return x.astype(hidden_states.dtype)


if __name__ == "__main__":
    key = jax.random.PRNGKey(0)

    # --- test 1: module-sized small f32 case (seq=8, hidden=32) ---
    seq, hidden = 8, 32
    k1, k2, k3, k4 = jax.random.split(key, 4)
    hidden_states = jax.random.normal(k1, (seq, hidden), dtype=jnp.float32)
    weight = jnp.ones((hidden,), jnp.float32) + 0.1 * jax.random.normal(
        k2, (hidden,), jnp.float32)

    module = LayerNormModule(hidden, eps=1e-5)
    module.weight = weight

    out, residuals = module(hidden_states, residuals=None)
    out = jax.block_until_ready(out)

    ref = _reference(hidden_states, weight, 1e-5)
    assert out.shape == hidden_states.shape
    assert out.dtype == hidden_states.dtype
    assert jnp.allclose(out, ref, atol=1e-5, rtol=1e-5)
    assert residuals is None

    # --- test 2: bf16, ragged row count (partial-block masking + >=2 grid steps) ---
    seq2, hidden2 = 40, 128
    x2 = jax.random.normal(k3, (seq2, hidden2), dtype=jnp.float32).astype(jnp.bfloat16)
    w2 = jnp.ones((hidden2,), jnp.float32)
    out2 = jax.block_until_ready(layer_norm(x2, w2, 1e-5))
    ref2 = _reference(x2, w2, 1e-5)
    assert out2.shape == x2.shape and out2.dtype == x2.dtype
    assert jnp.allclose(out2.astype(jnp.float32), ref2.astype(jnp.float32),
                        atol=2e-2, rtol=2e-2)

    # --- test 3: f32, multiple grid steps + non-trivial batch shape ---
    b3, s3, h3 = 2, 24, 256
    x3 = jax.random.normal(k4, (b3, s3, h3), dtype=jnp.float32)
    w3 = jnp.ones((h3,), jnp.float32)
    out3 = jax.block_until_ready(layer_norm(x3, w3, 1e-5, tile_rows=16))
    ref3 = _reference(x3, w3, 1e-5)
    assert out3.shape == x3.shape
    assert jnp.allclose(out3, ref3, atol=1e-5, rtol=1e-5)

    print("KERNEL_OK")
</pallas_src>

<mosaic_0001>
module attributes {stable_mosaic.version = 11 : i64} {
  func.func @_layer_norm_kernel(%arg0: i32, %arg1: memref<8x32xf32, #tpu.memory_space<vmem>>, %arg2: memref<1x32xf32, #tpu.memory_space<vmem>>, %arg3: memref<8x32xf32, #tpu.memory_space<vmem>>) attributes {dimension_semantics = [#tpu.dimension_semantics<parallel>], iteration_bounds = array<i64: 1>, scalar_prefetch = 0 : i64, scratch_operands = 0 : i64, tpu.core_type = #tpu.core_type<tc>, window_params = [{transform_indices = @transform_0, window_bounds = array<i64: 8, 32>}, {pipeline_mode = #tpu.pipeline_mode<synchronous>, transform_indices = @transform_1, window_bounds = array<i64: 1, 32>}, {transform_indices = @transform_2, window_bounds = array<i64: 8, 32>}]} {
    %c0 = arith.constant 0 : index
    %c0_0 = arith.constant 0 : index
    %0 = vector.load %arg1[%c0, %c0_0] : memref<8x32xf32, #tpu.memory_space<vmem>>, vector<8x32xf32>
    %cst = arith.constant dense<0.000000e+00> : vector<8xf32>
    %1 = vector.multi_reduction <add>, %0, %cst [1] : vector<8x32xf32> to vector<8xf32>
    %2 = vector.shape_cast %1 : vector<8xf32> to vector<8x1xf32>
    %cst_1 = arith.constant 3.200000e+01 : f32
    %3 = vector.broadcast %cst_1 : f32 to vector<8x1xf32>
    %4 = arith.divf %2, %3 : vector<8x1xf32>
    %5 = arith.mulf %0, %0 : vector<8x32xf32>
    %cst_2 = arith.constant dense<0.000000e+00> : vector<8xf32>
    %6 = vector.multi_reduction <add>, %5, %cst_2 [1] : vector<8x32xf32> to vector<8xf32>
    %7 = vector.shape_cast %6 : vector<8xf32> to vector<8x1xf32>
    %cst_3 = arith.constant 3.200000e+01 : f32
    %8 = vector.broadcast %cst_3 : f32 to vector<8x1xf32>
    %9 = arith.divf %7, %8 : vector<8x1xf32>
    %10 = arith.mulf %4, %4 : vector<8x1xf32>
    %11 = arith.subf %9, %10 : vector<8x1xf32>
    %cst_4 = arith.constant 0.000000e+00 : f32
    %12 = vector.broadcast %cst_4 : f32 to vector<8x1xf32>
    %13 = arith.maximumf %11, %12 : vector<8x1xf32>
    %cst_5 = arith.constant 9.99999974E-6 : f32
    %14 = vector.broadcast %cst_5 : f32 to vector<8x1xf32>
    %15 = arith.addf %13, %14 : vector<8x1xf32>
    %16 = math.rsqrt %15 : vector<8x1xf32>
    %17 = vector.broadcast %4 : vector<8x1xf32> to vector<8x32xf32>
    %18 = arith.subf %0, %17 : vector<8x32xf32>
    %19 = vector.broadcast %16 : vector<8x1xf32> to vector<8x32xf32>
    %20 = arith.mulf %18, %19 : vector<8x32xf32>
    %c0_6 = arith.constant 0 : index
    %c0_7 = arith.constant 0 : index
    %21 = vector.load %arg2[%c0_6, %c0_7] : memref<1x32xf32, #tpu.memory_space<vmem>>, vector<1x32xf32>
    %22 = vector.broadcast %21 : vector<1x32xf32> to vector<8x32xf32>
    %23 = arith.mulf %20, %22 : vector<8x32xf32>
    %c0_8 = arith.constant 0 : index
    %c0_9 = arith.constant 0 : index
    %24 = vector.load %arg3[%c0_8, %c0_9] : memref<8x32xf32, #tpu.memory_space<vmem>>, vector<8x32xf32>
    tpu.vector_store %arg3[%c0_8, %c0_9], %23 {strides = array<i32>} : memref<8x32xf32, #tpu.memory_space<vmem>>, vector<8x32xf32>,
    return
  }
  func.func @transform_0(%arg0: i32) -> (i32, i32) {
    %c0_i32 = arith.constant 0 : i32
    %c0_i32_0 = arith.constant 0 : i32
    return %arg0, %c0_i32 : i32, i32
  }
  func.func @transform_1(%arg0: i32) -> (i32, i32) {
    %c0_i32 = arith.constant 0 : i32
    %c0_i32_0 = arith.constant 0 : i32
    %c0_i32_1 = arith.constant 0 : i32
    return %c0_i32, %c0_i32_0 : i32, i32
  }
  func.func @transform_2(%arg0: i32) -> (i32, i32) {
    %c0_i32 = arith.constant 0 : i32
    %c0_i32_0 = arith.constant 0 : i32
    return %arg0, %c0_i32 : i32, i32
  }
}

</mosaic_0001>

<bundles_post_ra>
// kernel: tpu_custom_call.1
= control target key start
LH: loop header
LB: loop body
LE: loop exit
PB: predicated region body
PF: predicated region fallthrough
CT: control target
= control target key end

     0   :  { %7 = vsyncpa [#allocation3], 0  ;;  %s167_s0 = inlined_call_operand.hbm [shape: f32[8,32], index: 0, kind: input, shape index: {}]   ;;  %s168_s1 = inlined_call_operand.vmem [shape: f32[1,32], index: 1, kind: input, shape index: {}]   ;;  %s169_s2 = inlined_call_operand.hbm [shape: f32[8,32], index: 2, kind: output, shape index: {}]  }
   0x1   :  { %8 = vsyncpa [#allocation4], 0  ;;  %s120_s9 = smov [#allocation2]   ;;  %s72_s13 = scalar_lea.hbm %s167_s0, 128 }
   0x2   :  { %s15_s10 = sshll.u32 %s120_s9, 4  ;;  %p73_p0 = scmp.ne.s32.totalorder %s167_s0, %s72_s13  ;;  %s16_s10 = int_to_ptr.vmem [resolvable:$true] %s15_s10 }
   0x3   :  { %p76_p1 = scmp.lt.u32.totalorder %s72_s13, %s167_s0 }
   0x5   :  { %p78_p2 = pnand %p76_p1, %p73_p0 }
   0x7   :  { %81 = shalt.err (!%p78_p2)
}
   0x8   :  { %s82_s18 = scalar_lea.vmem %s16_s10, 128  ;;  %p87_p4 = scmp.lt.s32.totalorder %s16_s10, %s16_s10 }
   0x9   :  { %p83_p3 = scmp.ne.s32.totalorder %s16_s10, %s82_s18  ;;  %p88_p5 = scmp.lt.s32.totalorder %s82_s18, %s82_s18 }
   0xb   :  { %p89_p6 = por %p88_p5, %p87_p4 }
   0xd   :  { %p90_p7 = pnand %p89_p6, %p83_p3 }
   0xf   :  { %93 = shalt.err (!%p90_p7)
}
  0x10   :  { %18 = dma.hbm_to_vmem [thread:$0]  %s167_s0, 128, %s16_s10, [#allocation3]  }
  0x11   :  { %116 = dma.done.wait [#allocation3], 128  }
  0x12   :  { %117 = vsyncadd [#allocation3], 4294967168  ;;  %vm25_vm0 = vcmask 261120   ;;  %v24_v0 = vld [vmem:[#allocation2] sm:$0xff]  ;;  %s121_s22 = smov [#allocation5]  }
  0x13   :  { %v26_v1 = vsel %vm25_vm0, %v24_v0, 0.0  ;;  %v31_v2 = vmul.f32 %v24_v0, %v24_v0  ;;  %v67_v14 = vld [vmem:[%s168_s1] ss:$0 sm:$0xff]  ;;  %s58_s23 = sshll.u32 %s121_s22, 4  ;;  %s59_s23 = int_to_ptr.vmem [resolvable:$true] %s58_s23 }
  0x14   :  { %27 = vadd.xlane.f32.xlu0 %v26_v1  ;;  %s94_s24 = scalar_lea.vmem %s59_s23, 128  ;;  %p99_p9 = scmp.lt.s32.totalorder %s59_s23, %s59_s23 }
  0x15   :  { %v32_v3 = vsel %vm25_vm0, %v31_v2, 0.0  ;;  %p95_p8 = scmp.ne.s32.totalorder %s59_s23, %s94_s24  ;;  %p100_p10 = scmp.lt.s32.totalorder %s94_s24, %s94_s24 }
  0x17   :  { %p101_p11 = por %p100_p10, %p99_p9 }
  0x18   :  { %33 = vadd.xlane.f32.xlu0 %v32_v3 }
  0x19   :  { %p102_p12 = pnand %p101_p11, %p95_p8 }
  0xa1   :  { %v28_v4 = vpop.xlane.xlu0 %27 }
  0xa2   :  { %v30_v5 = vmul.f32 0.03125, %v28_v4 }
  0xa4   :  { %v36_v7 = vmul.f32 %v30_v5, %v30_v5  ;;  %v41_v12 = vsub.f32 %v24_v0, %v30_v5 }
  0xa5   :  { %v34_v6 = vpop.xlane.xlu0 %33 }
  0xa6   :  { %v35_v8 = vmul.f32 0.03125, %v34_v6 }
  0xa8   :  { %v37_v9 = vsub.f32 %v35_v8, %v36_v7 }
  0xaa   :  { %v38_v10 = vmax.f32 %v37_v9, 0.0 }
  0xac   :  { %v39_v11 = vadd.f32 1e-05, %v38_v10 }
  0xae   :  { %70 = vrsqrt.f32 %v39_v11 }
  0xb8   :  { %v71_v13 = vpop.eup %70 }
  0xb9   :  { %v42_v15 = vmul.f32 %v71_v13, %v41_v12 }
  0xbb   :  { %v50_v16 = vmul.f32 %v67_v14, %v42_v15 }
  0xbd   :  { %51 = vst.msk [vmem:[#allocation5] sm:$0xff] %vm25_vm0, %v50_v16 }
  0xbe   :  { %105 = shalt.err (!%p102_p12)
}
  0xbf   :  { %s106_s27 = scalar_lea.hbm %s169_s2, 128 }
  0xc0   :  { %p107_p13 = scmp.ne.s32.totalorder %s169_s2, %s106_s27  ;;  %p110_p0 = scmp.lt.u32.totalorder %s106_s27, %s169_s2 }
  0xc2   :  { %p112_p1 = pnand %p110_p0, %p107_p13 }
  0xc4   :  { %115 = shalt.err (!%p112_p1)
}
  0xc5   :  { %61 = dma.vmem_to_hbm [thread:$0]  %s59_s23, 128, %s169_s2, [#allocation4]  }
  0xc6   :  { %118 = dma.done.wait [#allocation4], 128  }
  0xc7   :  { %119 = vsyncadd [#allocation4], 4294967168 }
  0xc8   :  { %65 = vsyncpa [#allocation3], 1 }
  0xc9   :  { %66 = vsyncpa [#allocation4], 1 }

</bundles_post_ra>
